<compile_context>
chip_gen: v7x
topology: tpu7x:2x2x1
jax: 0.10.0
libtpu: 0.0.40
codegen_flags: <defaults>
</compile_context>

<pallas_src>
import jax
import jax.numpy as jnp
from jax.experimental import pallas as pl
from jax.experimental.pallas import tpu as pltpu

# ----------------------- config (small, consistent with module) -------------
B, L, C = 2, 12, 4              # batch, seq_len, input_size (b*l*c divisible by 6)
NUM_CHANNELS = (8, 8)           # two TemporalBlocks
K = 3                           # kernel_size
PARTS = 6
H1, H2 = NUM_CHANNELS

CPAD = 8                        # channel rows padded to one sublane tile
L_PAD = 16                      # time padded to a multiple of 8
PARTS_PAD = 8                   # parts padded so the lane axis is 2 full vregs
SEG = B * L_PAD                 # 32 lanes per part
M = PARTS_PAD * SEG             # 256 lanes total

# weight-slab block indices ((8, 8) blocks stacked along lanes -> (8, 128))
W1A, W1B, WD1, W2A, W2B, WLIN, BIAS = 0, 3, 6, 7, 10, 13, 14


# ----------------------------- Pallas kernel --------------------------------
def tcn_kernel(x_ref, m_ref, w_ref, o_ref):
    Wf = w_ref[...]                                  # (8, 128) packed weights/biases
    mask = m_ref[...]                                # (8, 256); 1.0 == masked
    xm = x_ref[...] * (1.0 - mask)                   # masked_fill(mask, 0), all parts

    def wblk(k):                                     # (8, 8) bf16 weight block k
        return Wf[:, k * 8:(k + 1) * 8].astype(jnp.bfloat16)

    def bcol(j):                                     # (8, 1) f32 bias column j
        return Wf[:, BIAS * 8 + j:BIAS * 8 + j + 1]

    # per-lane time index within its 16-lane (part, batch) segment; a causal
    # tap of shift s must not read across a segment boundary -> validity masks
    t_idx = jax.lax.broadcasted_iota(jnp.int32, (CPAD, M), 1) % L_PAD
    tapmask = {s: (t_idx >= s).astype(jnp.float32) for s in (1, 2, 4)}

    def cconv(h, wk0, bj, d):
        """Dilated causal Conv1d (+Chomp1d): K lane rolls + K matmuls + bias."""
        acc = jnp.dot(wblk(wk0 + K - 1), h.astype(jnp.bfloat16),
                      preferred_element_type=jnp.float32)        # shift-0 tap
        for j in range(K - 1):
            s = (K - 1 - j) * d                                  # tap shift
            hj = pltpu.roll(h, s, axis=1) * tapmask[s]
            acc = acc + jnp.dot(wblk(wk0 + j), hj.astype(jnp.bfloat16),
                                preferred_element_type=jnp.float32)
        return acc + bcol(bj)

    # TemporalBlock 0: dilation=1, C -> H1, 1x1-conv downsample residual
    h = jnp.maximum(cconv(xm, W1A, 0, 1), 0.0)
    h = jnp.maximum(cconv(h, W1B, 1, 1), 0.0)
    res = jnp.dot(wblk(WD1), xm.astype(jnp.bfloat16),
                  preferred_element_type=jnp.float32) + bcol(2)
    h = jnp.maximum(h + res, 0.0)                    # (8, 256)

    # TemporalBlock 1: dilation=2, H1 -> H2, identity residual
    g = jnp.maximum(cconv(h, W2A, 3, 2), 0.0)
    g = jnp.maximum(cconv(g, W2B, 4, 2), 0.0)
    g = jnp.maximum(g + h, 0.0)                      # (8, 256)

    # final Linear(H2 -> C); keep only masked positions; sum over the 6 parts
    y = (jnp.dot(wblk(WLIN), g.astype(jnp.bfloat16),
                 preferred_element_type=jnp.float32) + bcol(5)) * mask
    out = y[:, 0:SEG]
    for p in range(1, PARTS):                        # dummy parts 6,7 never summed
        out = out + y[:, p * SEG:(p + 1) * SEG]
    o_ref[...] = out                                 # (8, 32) single dense write


# ------------------------------- wrapper -------------------------------------
def _pad_block(w_oi):
    """(out, in) matrix -> zero-padded (8, 8) block."""
    o, i = w_oi.shape
    return jnp.zeros((8, 8), jnp.float32).at[:o, :i].set(w_oi)


def tcn_pallas(x, mask, params):
    (w1a, b1a, w1b, b1b, wd1, bd1, w2a, b2a, w2b, b2b, wlin, blin) = params

    # ---- pack every weight/bias into one (8, 128) f32 slab (1 DMA) ----
    blocks = [_pad_block(w1a[j].T) for j in range(K)]         # W1A taps
    blocks += [_pad_block(w1b[j].T) for j in range(K)]         # W1B taps
    blocks += [_pad_block(wd1.T)]                              # WD1 (1x1 downsample)
    blocks += [_pad_block(w2a[j].T) for j in range(K)]         # W2A taps
    blocks += [_pad_block(w2b[j].T) for j in range(K)]         # W2B taps
    blocks += [_pad_block(wlin.T)]                             # WLIN
    bias_blk = jnp.zeros((8, 8), jnp.float32)
    for col, bv in enumerate((b1a[0], b1b[0], bd1[0], b2a[0], b2b[0], blin[0])):
        bias_blk = bias_blk.at[:bv.shape[0], col].set(bv)
    blocks += [bias_blk, jnp.zeros((8, 8), jnp.float32)]       # BIAS, pad block
    wslab = jnp.concatenate(blocks, axis=1)                    # (8, 128)

    # ---- lane-dense transposed activations: (channel, part*batch*time) ----
    xp = jnp.pad(x, ((0, 0), (0, L_PAD - L), (0, 0)))                   # (B, L_PAD, C)
    x_t = jnp.pad(jnp.transpose(xp, (2, 0, 1)).reshape(C, SEG),
                  ((0, CPAD - C), (0, 0)))                              # (8, 32)
    x_t = jnp.tile(x_t, (1, PARTS_PAD))                                 # (8, 256)

    mp = jnp.pad(mask, ((0, PARTS_PAD - PARTS), (0, 0), (0, L_PAD - L), (0, 0)))
    m_t = jnp.pad(jnp.transpose(mp, (3, 0, 1, 2)).reshape(C, M),
                  ((0, CPAD - C), (0, 0)))                              # (8, 256)

    out = pl.pallas_call(
        tcn_kernel,
        out_shape=jax.ShapeDtypeStruct((CPAD, SEG), jnp.float32),
    )(x_t, m_t, wslab)

    # (C_pad, B*L_PAD) -> (B, L, C): layout plumbing only
    return out.reshape(CPAD, B, L_PAD).transpose(1, 2, 0)[:, :L, :C]


# --------------------------- pure-JAX reference ------------------------------
def tcn_ref(x, mask, params):
    (w1a, b1a, w1b, b1b, wd1, bd1, w2a, b2a, w2b, b2b, wlin, blin) = params
    hi = jax.lax.Precision.HIGHEST

    def cconv(h, w, b, d):
        k = w.shape[0]
        pad = (k - 1) * d
        hp = jnp.pad(h, ((0, 0), (pad, 0), (0, 0)))
        out = sum(jnp.einsum('blc,co->blo', hp[:, j * d: j * d + h.shape[1]], w[j],
                             precision=hi)
                  for j in range(k))
        return out + b[0]

    acc = jnp.zeros((B, L, C), jnp.float32)
    for i in range(PARTS):
        m = mask[i]
        xm = x * (1.0 - m)
        h = jnp.maximum(cconv(xm, w1a, b1a, 1), 0.0)
        h = jnp.maximum(cconv(h, w1b, b1b, 1), 0.0)
        res = jnp.einsum('blc,co->blo', xm, wd1, precision=hi) + bd1[0]
        h = jnp.maximum(h + res, 0.0)
        h2 = jnp.maximum(cconv(h, w2a, b2a, 2), 0.0)
        h2 = jnp.maximum(cconv(h2, w2b, b2b, 2), 0.0)
        h2 = jnp.maximum(h2 + h, 0.0)
        y = (jnp.einsum('blh,hc->blc', h2, wlin, precision=hi) + blin[0]) * m
        acc = acc + y
    return acc


# ------------------------------------ main -----------------------------------
if __name__ == "__main__":
    key = jax.random.PRNGKey(0)
    keys = jax.random.split(key, 16)

    def nrm(k, shape):
        return (0.01 * jax.random.normal(k, shape)).astype(jnp.float32)

    # deterministic synthetic parameters (shapes follow the module __init__)
    w1a = nrm(keys[0], (K, C, H1));   b1a = nrm(keys[1], (1, H1))
    w1b = nrm(keys[2], (K, H1, H1));  b1b = nrm(keys[3], (1, H1))
    wd1 = nrm(keys[4], (C, H1));      bd1 = nrm(keys[5], (1, H1))
    w2a = nrm(keys[6], (K, H1, H2));  b2a = nrm(keys[7], (1, H2))
    w2b = nrm(keys[8], (K, H2, H2));  b2b = nrm(keys[9], (1, H2))
    wlin = nrm(keys[10], (H2, C));    blin = nrm(keys[11], (1, C))
    params = (w1a, b1a, w1b, b1b, wd1, bd1, w2a, b2a, w2b, b2b, wlin, blin)

    # input x: (b, l, c)
    x = jax.random.normal(keys[12], (B, L, C), jnp.float32)

    # deterministic "creatMaskEvenSplit": disjoint random 6-way split of elements
    # TODO(synk): torch's random.sample is replaced by a jax permutation here.
    n_elems = B * L * C
    slice_num = n_elems // PARTS
    perm = jax.random.permutation(keys[13], n_elems)
    mask_flat = jnp.zeros((PARTS, n_elems), jnp.float32)
    for i in range(PARTS):
        idx = perm[i * slice_num:(i + 1) * slice_num]
        mask_flat = mask_flat.at[i, idx].set(1.0)
    mask = mask_flat.reshape(PARTS, B, L, C)   # 1.0 == masked element

    out = jax.block_until_ready(tcn_pallas(x, mask, params))
    ref = jax.block_until_ready(tcn_ref(x, mask, params))

    assert out.shape == (B, L, C)
    assert bool(jnp.allclose(out, ref, rtol=2e-2, atol=1e-4)), "mismatch vs reference"
    print("KERNEL_OK")
</pallas_src>

<mosaic_0001>
module attributes {stable_mosaic.version = 11 : i64} {
  func.func @tcn_kernel(%arg0: memref<8x256xf32, #tpu.memory_space<vmem>>, %arg1: memref<8x256xf32, #tpu.memory_space<vmem>>, %arg2: memref<8x128xf32, #tpu.memory_space<vmem>>, %arg3: memref<8x32xf32, #tpu.memory_space<vmem>>) attributes {dimension_semantics = [], scalar_prefetch = 0 : i64, scratch_operands = 0 : i64, tpu.core_type = #tpu.core_type<tc>} {
    %c0 = arith.constant 0 : index
    %c0_0 = arith.constant 0 : index
    %0 = vector.load %arg2[%c0, %c0_0] : memref<8x128xf32, #tpu.memory_space<vmem>>, vector<8x128xf32>
    %c0_1 = arith.constant 0 : index
    %c0_2 = arith.constant 0 : index
    %1 = vector.load %arg1[%c0_1, %c0_2] : memref<8x256xf32, #tpu.memory_space<vmem>>, vector<8x256xf32>
    %c0_3 = arith.constant 0 : index
    %c0_4 = arith.constant 0 : index
    %2 = vector.load %arg0[%c0_3, %c0_4] : memref<8x256xf32, #tpu.memory_space<vmem>>, vector<8x256xf32>
    %cst = arith.constant 1.000000e+00 : f32
    %3 = vector.broadcast %cst : f32 to vector<8x256xf32>
    %4 = arith.subf %3, %1 : vector<8x256xf32>
    %5 = arith.mulf %2, %4 : vector<8x256xf32>
    %6 = tpu.iota {dimensions = array<i32: 1>} : vector<8x256xi32>
    %c16_i32 = arith.constant 16 : i32
    %c0_i32 = arith.constant 0 : i32
    %7 = arith.cmpi eq, %c16_i32, %c0_i32 : i32
    %c1_i32 = arith.constant 1 : i32
    %8 = arith.select %7, %c1_i32, %c16_i32 : i32
    %9 = vector.broadcast %8 : i32 to vector<8x256xi32>
    %10 = arith.remsi %6, %9 : vector<8x256xi32>
    %c0_i32_5 = arith.constant 0 : i32
    %11 = vector.broadcast %c0_i32_5 : i32 to vector<8x256xi32>
    %12 = arith.cmpi ne, %10, %11 : vector<8x256xi32>
    %c0_i32_6 = arith.constant 0 : i32
    %13 = vector.broadcast %c0_i32_6 : i32 to vector<8x256xi32>
    %14 = arith.cmpi slt, %10, %13 : vector<8x256xi32>
    %c0_i32_7 = arith.constant 0 : i32
    %15 = arith.cmpi slt, %8, %c0_i32_7 : i32
    %16 = vector.broadcast %15 : i1 to vector<8x256xi1>
    %17 = vector.broadcast %16 : vector<8x256xi1> to vector<8x256xi1>
    %18 = arith.xori %14, %17 : vector<8x256xi1>
    %19 = arith.andi %18, %12 : vector<8x256xi1>
    %20 = vector.broadcast %8 : i32 to vector<8x256xi32>
    %21 = arith.addi %10, %20 : vector<8x256xi32>
    %22 = arith.select %19, %21, %10 : vector<8x256xi1>, vector<8x256xi32>
    %c1_i32_8 = arith.constant 1 : i32
    %23 = vector.broadcast %c1_i32_8 : i32 to vector<8x256xi32>
    %24 = arith.cmpi sge, %22, %23 : vector<8x256xi32>
    %25 = arith.extui %24 : vector<8x256xi1> to vector<8x256xi32>
    %26 = arith.sitofp %25 : vector<8x256xi32> to vector<8x256xf32>
    %c2_i32 = arith.constant 2 : i32
    %27 = vector.broadcast %c2_i32 : i32 to vector<8x256xi32>
    %28 = arith.cmpi sge, %22, %27 : vector<8x256xi32>
    %29 = arith.extui %28 : vector<8x256xi1> to vector<8x256xi32>
    %30 = arith.sitofp %29 : vector<8x256xi32> to vector<8x256xf32>
    %c4_i32 = arith.constant 4 : i32
    %31 = vector.broadcast %c4_i32 : i32 to vector<8x256xi32>
    %32 = arith.cmpi sge, %22, %31 : vector<8x256xi32>
    %33 = arith.extui %32 : vector<8x256xi1> to vector<8x256xi32>
    %34 = arith.sitofp %33 : vector<8x256xi32> to vector<8x256xf32>
    %35 = vector.extract_strided_slice %0 {offsets = [0, 16], sizes = [8, 8], strides = [1, 1]} : vector<8x128xf32> to vector<8x8xf32>
    %36 = arith.truncf %35 : vector<8x8xf32> to vector<8x8xbf16>
    %37 = arith.truncf %5 : vector<8x256xf32> to vector<8x256xbf16>
    %cst_9 = arith.constant dense<0.000000e+00> : vector<8x256xf32>
    %38 = tpu.matmul %36, %37, %cst_9 {dimension_numbers = #tpu.dot_dimension_numbers<[1], [0], [0], [1], [0, 0, 1, 1], [], []>} : vector<8x8xbf16>, vector<8x256xbf16>, vector<8x256xf32> -> vector<8x256xf32>
    %c2_i32_10 = arith.constant 2 : i32
    %39 = tpu.dynamic_rotate %5 by %c2_i32_10 dim 1 : vector<8x256xf32>, i32 -> vector<8x256xf32>
    %40 = arith.mulf %39, %30 : vector<8x256xf32>
    %41 = vector.extract_strided_slice %0 {offsets = [0, 0], sizes = [8, 8], strides = [1, 1]} : vector<8x128xf32> to vector<8x8xf32>
    %42 = arith.truncf %41 : vector<8x8xf32> to vector<8x8xbf16>
    %43 = arith.truncf %40 : vector<8x256xf32> to vector<8x256xbf16>
    %cst_11 = arith.constant dense<0.000000e+00> : vector<8x256xf32>
    %44 = tpu.matmul %42, %43, %cst_11 {dimension_numbers = #tpu.dot_dimension_numbers<[1], [0], [0], [1], [0, 0, 1, 1], [], []>} : vector<8x8xbf16>, vector<8x256xbf16>, vector<8x256xf32> -> vector<8x256xf32>
    %45 = arith.addf %38, %44 : vector<8x256xf32>
    %c1_i32_12 = arith.constant 1 : i32
    %46 = tpu.dynamic_rotate %5 by %c1_i32_12 dim 1 : vector<8x256xf32>, i32 -> vector<8x256xf32>
    %47 = arith.mulf %46, %26 : vector<8x256xf32>
    %48 = vector.extract_strided_slice %0 {offsets = [0, 8], sizes = [8, 8], strides = [1, 1]} : vector<8x128xf32> to vector<8x8xf32>
    %49 = arith.truncf %48 : vector<8x8xf32> to vector<8x8xbf16>
    %50 = arith.truncf %47 : vector<8x256xf32> to vector<8x256xbf16>
    %cst_13 = arith.constant dense<0.000000e+00> : vector<8x256xf32>
    %51 = tpu.matmul %49, %50, %cst_13 {dimension_numbers = #tpu.dot_dimension_numbers<[1], [0], [0], [1], [0, 0, 1, 1], [], []>} : vector<8x8xbf16>, vector<8x256xbf16>, vector<8x256xf32> -> vector<8x256xf32>
    %52 = arith.addf %45, %51 : vector<8x256xf32>
    %53 = vector.extract_strided_slice %0 {offsets = [0, 112], sizes = [8, 1], strides = [1, 1]} : vector<8x128xf32> to vector<8x1xf32>
    %54 = vector.broadcast %53 : vector<8x1xf32> to vector<8x256xf32>
    %55 = arith.addf %52, %54 : vector<8x256xf32>
    %cst_14 = arith.constant 0.000000e+00 : f32
    %56 = vector.broadcast %cst_14 : f32 to vector<8x256xf32>
    %57 = arith.maximumf %55, %56 : vector<8x256xf32>
    %58 = vector.extract_strided_slice %0 {offsets = [0, 40], sizes = [8, 8], strides = [1, 1]} : vector<8x128xf32> to vector<8x8xf32>
    %59 = arith.truncf %58 : vector<8x8xf32> to vector<8x8xbf16>
    %60 = arith.truncf %57 : vector<8x256xf32> to vector<8x256xbf16>
    %cst_15 = arith.constant dense<0.000000e+00> : vector<8x256xf32>
    %61 = tpu.matmul %59, %60, %cst_15 {dimension_numbers = #tpu.dot_dimension_numbers<[1], [0], [0], [1], [0, 0, 1, 1], [], []>} : vector<8x8xbf16>, vector<8x256xbf16>, vector<8x256xf32> -> vector<8x256xf32>
    %c2_i32_16 = arith.constant 2 : i32
    %62 = tpu.dynamic_rotate %57 by %c2_i32_16 dim 1 : vector<8x256xf32>, i32 -> vector<8x256xf32>
    %63 = arith.mulf %62, %30 : vector<8x256xf32>
    %64 = vector.extract_strided_slice %0 {offsets = [0, 24], sizes = [8, 8], strides = [1, 1]} : vector<8x128xf32> to vector<8x8xf32>
    %65 = arith.truncf %64 : vector<8x8xf32> to vector<8x8xbf16>
    %66 = arith.truncf %63 : vector<8x256xf32> to vector<8x256xbf16>
    %cst_17 = arith.constant dense<0.000000e+00> : vector<8x256xf32>
    %67 = tpu.matmul %65, %66, %cst_17 {dimension_numbers = #tpu.dot_dimension_numbers<[1], [0], [0], [1], [0, 0, 1, 1], [], []>} : vector<8x8xbf16>, vector<8x256xbf16>, vector<8x256xf32> -> vector<8x256xf32>
    %68 = arith.addf %61, %67 : vector<8x256xf32>
    %c1_i32_18 = arith.constant 1 : i32
    %69 = tpu.dynamic_rotate %57 by %c1_i32_18 dim 1 : vector<8x256xf32>, i32 -> vector<8x256xf32>
    %70 = arith.mulf %69, %26 : vector<8x256xf32>
    %71 = vector.extract_strided_slice %0 {offsets = [0, 32], sizes = [8, 8], strides = [1, 1]} : vector<8x128xf32> to vector<8x8xf32>
    %72 = arith.truncf %71 : vector<8x8xf32> to vector<8x8xbf16>
    %73 = arith.truncf %70 : vector<8x256xf32> to vector<8x256xbf16>
    %cst_19 = arith.constant dense<0.000000e+00> : vector<8x256xf32>
    %74 = tpu.matmul %72, %73, %cst_19 {dimension_numbers = #tpu.dot_dimension_numbers<[1], [0], [0], [1], [0, 0, 1, 1], [], []>} : vector<8x8xbf16>, vector<8x256xbf16>, vector<8x256xf32> -> vector<8x256xf32>
    %75 = arith.addf %68, %74 : vector<8x256xf32>
    %76 = vector.extract_strided_slice %0 {offsets = [0, 113], sizes = [8, 1], strides = [1, 1]} : vector<8x128xf32> to vector<8x1xf32>
    %77 = vector.broadcast %76 : vector<8x1xf32> to vector<8x256xf32>
    %78 = arith.addf %75, %77 : vector<8x256xf32>
    %cst_20 = arith.constant 0.000000e+00 : f32
    %79 = vector.broadcast %cst_20 : f32 to vector<8x256xf32>
    %80 = arith.maximumf %78, %79 : vector<8x256xf32>
    %81 = vector.extract_strided_slice %0 {offsets = [0, 48], sizes = [8, 8], strides = [1, 1]} : vector<8x128xf32> to vector<8x8xf32>
    %82 = arith.truncf %81 : vector<8x8xf32> to vector<8x8xbf16>
    %83 = arith.truncf %5 : vector<8x256xf32> to vector<8x256xbf16>
    %cst_21 = arith.constant dense<0.000000e+00> : vector<8x256xf32>
    %84 = tpu.matmul %82, %83, %cst_21 {dimension_numbers = #tpu.dot_dimension_numbers<[1], [0], [0], [1], [0, 0, 1, 1], [], []>} : vector<8x8xbf16>, vector<8x256xbf16>, vector<8x256xf32> -> vector<8x256xf32>
    %85 = vector.extract_strided_slice %0 {offsets = [0, 114], sizes = [8, 1], strides = [1, 1]} : vector<8x128xf32> to vector<8x1xf32>
    %86 = vector.broadcast %85 : vector<8x1xf32> to vector<8x256xf32>
    %87 = arith.addf %84, %86 : vector<8x256xf32>
    %88 = arith.addf %80, %87 : vector<8x256xf32>
    %cst_22 = arith.constant 0.000000e+00 : f32
    %89 = vector.broadcast %cst_22 : f32 to vector<8x256xf32>
    %90 = arith.maximumf %88, %89 : vector<8x256xf32>
    %91 = vector.extract_strided_slice %0 {offsets = [0, 72], sizes = [8, 8], strides = [1, 1]} : vector<8x128xf32> to vector<8x8xf32>
    %92 = arith.truncf %91 : vector<8x8xf32> to vector<8x8xbf16>
    %93 = arith.truncf %90 : vector<8x256xf32> to vector<8x256xbf16>
    %cst_23 = arith.constant dense<0.000000e+00> : vector<8x256xf32>
    %94 = tpu.matmul %92, %93, %cst_23 {dimension_numbers = #tpu.dot_dimension_numbers<[1], [0], [0], [1], [0, 0, 1, 1], [], []>} : vector<8x8xbf16>, vector<8x256xbf16>, vector<8x256xf32> -> vector<8x256xf32>
    %c4_i32_24 = arith.constant 4 : i32
    %95 = tpu.dynamic_rotate %90 by %c4_i32_24 dim 1 : vector<8x256xf32>, i32 -> vector<8x256xf32>
    %96 = arith.mulf %95, %34 : vector<8x256xf32>
    %97 = vector.extract_strided_slice %0 {offsets = [0, 56], sizes = [8, 8], strides = [1, 1]} : vector<8x128xf32> to vector<8x8xf32>
    %98 = arith.truncf %97 : vector<8x8xf32> to vector<8x8xbf16>
    %99 = arith.truncf %96 : vector<8x256xf32> to vector<8x256xbf16>
    %cst_25 = arith.constant dense<0.000000e+00> : vector<8x256xf32>
    %100 = tpu.matmul %98, %99, %cst_25 {dimension_numbers = #tpu.dot_dimension_numbers<[1], [0], [0], [1], [0, 0, 1, 1], [], []>} : vector<8x8xbf16>, vector<8x256xbf16>, vector<8x256xf32> -> vector<8x256xf32>
    %101 = arith.addf %94, %100 : vector<8x256xf32>
    %c2_i32_26 = arith.constant 2 : i32
    %102 = tpu.dynamic_rotate %90 by %c2_i32_26 dim 1 : vector<8x256xf32>, i32 -> vector<8x256xf32>
    %103 = arith.mulf %102, %30 : vector<8x256xf32>
    %104 = vector.extract_strided_slice %0 {offsets = [0, 64], sizes = [8, 8], strides = [1, 1]} : vector<8x128xf32> to vector<8x8xf32>
    %105 = arith.truncf %104 : vector<8x8xf32> to vector<8x8xbf16>
    %106 = arith.truncf %103 : vector<8x256xf32> to vector<8x256xbf16>
    %cst_27 = arith.constant dense<0.000000e+00> : vector<8x256xf32>
    %107 = tpu.matmul %105, %106, %cst_27 {dimension_numbers = #tpu.dot_dimension_numbers<[1], [0], [0], [1], [0, 0, 1, 1], [], []>} : vector<8x8xbf16>, vector<8x256xbf16>, vector<8x256xf32> -> vector<8x256xf32>
    %108 = arith.addf %101, %107 : vector<8x256xf32>
    %109 = vector.extract_strided_slice %0 {offsets = [0, 115], sizes = [8, 1], strides = [1, 1]} : vector<8x128xf32> to vector<8x1xf32>
    %110 = vector.broadcast %109 : vector<8x1xf32> to vector<8x256xf32>
    %111 = arith.addf %108, %110 : vector<8x256xf32>
    %cst_28 = arith.constant 0.000000e+00 : f32
    %112 = vector.broadcast %cst_28 : f32 to vector<8x256xf32>
    %113 = arith.maximumf %111, %112 : vector<8x256xf32>
    %114 = vector.extract_strided_slice %0 {offsets = [0, 96], sizes = [8, 8], strides = [1, 1]} : vector<8x128xf32> to vector<8x8xf32>
    %115 = arith.truncf %114 : vector<8x8xf32> to vector<8x8xbf16>
    %116 = arith.truncf %113 : vector<8x256xf32> to vector<8x256xbf16>
    %cst_29 = arith.constant dense<0.000000e+00> : vector<8x256xf32>
    %117 = tpu.matmul %115, %116, %cst_29 {dimension_numbers = #tpu.dot_dimension_numbers<[1], [0], [0], [1], [0, 0, 1, 1], [], []>} : vector<8x8xbf16>, vector<8x256xbf16>, vector<8x256xf32> -> vector<8x256xf32>
    %c4_i32_30 = arith.constant 4 : i32
    %118 = tpu.dynamic_rotate %113 by %c4_i32_30 dim 1 : vector<8x256xf32>, i32 -> vector<8x256xf32>
    %119 = arith.mulf %118, %34 : vector<8x256xf32>
    %120 = vector.extract_strided_slice %0 {offsets = [0, 80], sizes = [8, 8], strides = [1, 1]} : vector<8x128xf32> to vector<8x8xf32>
    %121 = arith.truncf %120 : vector<8x8xf32> to vector<8x8xbf16>
    %122 = arith.truncf %119 : vector<8x256xf32> to vector<8x256xbf16>
    %cst_31 = arith.constant dense<0.000000e+00> : vector<8x256xf32>
    %123 = tpu.matmul %121, %122, %cst_31 {dimension_numbers = #tpu.dot_dimension_numbers<[1], [0], [0], [1], [0, 0, 1, 1], [], []>} : vector<8x8xbf16>, vector<8x256xbf16>, vector<8x256xf32> -> vector<8x256xf32>
    %124 = arith.addf %117, %123 : vector<8x256xf32>
    %c2_i32_32 = arith.constant 2 : i32
    %125 = tpu.dynamic_rotate %113 by %c2_i32_32 dim 1 : vector<8x256xf32>, i32 -> vector<8x256xf32>
    %126 = arith.mulf %125, %30 : vector<8x256xf32>
    %127 = vector.extract_strided_slice %0 {offsets = [0, 88], sizes = [8, 8], strides = [1, 1]} : vector<8x128xf32> to vector<8x8xf32>
    %128 = arith.truncf %127 : vector<8x8xf32> to vector<8x8xbf16>
    %129 = arith.truncf %126 : vector<8x256xf32> to vector<8x256xbf16>
    %cst_33 = arith.constant dense<0.000000e+00> : vector<8x256xf32>
    %130 = tpu.matmul %128, %129, %cst_33 {dimension_numbers = #tpu.dot_dimension_numbers<[1], [0], [0], [1], [0, 0, 1, 1], [], []>} : vector<8x8xbf16>, vector<8x256xbf16>, vector<8x256xf32> -> vector<8x256xf32>
    %131 = arith.addf %124, %130 : vector<8x256xf32>
    %132 = vector.extract_strided_slice %0 {offsets = [0, 116], sizes = [8, 1], strides = [1, 1]} : vector<8x128xf32> to vector<8x1xf32>
    %133 = vector.broadcast %132 : vector<8x1xf32> to vector<8x256xf32>
    %134 = arith.addf %131, %133 : vector<8x256xf32>
    %cst_34 = arith.constant 0.000000e+00 : f32
    %135 = vector.broadcast %cst_34 : f32 to vector<8x256xf32>
    %136 = arith.maximumf %134, %135 : vector<8x256xf32>
    %137 = arith.addf %136, %90 : vector<8x256xf32>
    %cst_35 = arith.constant 0.000000e+00 : f32
    %138 = vector.broadcast %cst_35 : f32 to vector<8x256xf32>
    %139 = arith.maximumf %137, %138 : vector<8x256xf32>
    %140 = vector.extract_strided_slice %0 {offsets = [0, 104], sizes = [8, 8], strides = [1, 1]} : vector<8x128xf32> to vector<8x8xf32>
    %141 = arith.truncf %140 : vector<8x8xf32> to vector<8x8xbf16>
    %142 = arith.truncf %139 : vector<8x256xf32> to vector<8x256xbf16>
    %cst_36 = arith.constant dense<0.000000e+00> : vector<8x256xf32>
    %143 = tpu.matmul %141, %142, %cst_36 {dimension_numbers = #tpu.dot_dimension_numbers<[1], [0], [0], [1], [0, 0, 1, 1], [], []>} : vector<8x8xbf16>, vector<8x256xbf16>, vector<8x256xf32> -> vector<8x256xf32>
    %144 = vector.extract_strided_slice %0 {offsets = [0, 117], sizes = [8, 1], strides = [1, 1]} : vector<8x128xf32> to vector<8x1xf32>
    %145 = vector.broadcast %144 : vector<8x1xf32> to vector<8x256xf32>
    %146 = arith.addf %143, %145 : vector<8x256xf32>
    %147 = arith.mulf %146, %1 : vector<8x256xf32>
    %148 = vector.extract_strided_slice %147 {offsets = [0, 0], sizes = [8, 32], strides = [1, 1]} : vector<8x256xf32> to vector<8x32xf32>
    %149 = vector.extract_strided_slice %147 {offsets = [0, 32], sizes = [8, 32], strides = [1, 1]} : vector<8x256xf32> to vector<8x32xf32>
    %150 = arith.addf %148, %149 : vector<8x32xf32>
    %151 = vector.extract_strided_slice %147 {offsets = [0, 64], sizes = [8, 32], strides = [1, 1]} : vector<8x256xf32> to vector<8x32xf32>
    %152 = arith.addf %150, %151 : vector<8x32xf32>
    %153 = vector.extract_strided_slice %147 {offsets = [0, 96], sizes = [8, 32], strides = [1, 1]} : vector<8x256xf32> to vector<8x32xf32>
    %154 = arith.addf %152, %153 : vector<8x32xf32>
    %155 = vector.extract_strided_slice %147 {offsets = [0, 128], sizes = [8, 32], strides = [1, 1]} : vector<8x256xf32> to vector<8x32xf32>
    %156 = arith.addf %154, %155 : vector<8x32xf32>
    %157 = vector.extract_strided_slice %147 {offsets = [0, 160], sizes = [8, 32], strides = [1, 1]} : vector<8x256xf32> to vector<8x32xf32>
    %158 = arith.addf %156, %157 : vector<8x32xf32>
    %c0_37 = arith.constant 0 : index
    %c0_38 = arith.constant 0 : index
    %159 = vector.load %arg3[%c0_37, %c0_38] : memref<8x32xf32, #tpu.memory_space<vmem>>, vector<8x32xf32>
    tpu.vector_store %arg3[%c0_37, %c0_38], %158 {strides = array<i32>} : memref<8x32xf32, #tpu.memory_space<vmem>>, vector<8x32xf32>,
    return
  }
}

</mosaic_0001>

<bundles_post_ra>
// kernel: tpu_custom_call.1
= control target key start
LH: loop header
LB: loop body
LE: loop exit
PB: predicated region body
PF: predicated region fallthrough
CT: control target
= control target key end

     0   :  { %8 = vsyncpa [#allocation3], 0  ;;  %s1494_s0 = inlined_call_operand.hbm [shape: f32[8,256], index: 0, kind: input, shape index: {}]   ;;  %s1495_s1 = inlined_call_operand.hbm [shape: f32[8,256], index: 1, kind: input, shape index: {}]   ;;  %s1496_s2 = inlined_call_operand.hbm [shape: f32[8,128], index: 2, kind: input, shape index: {}]   ;;  %s1497_s3 = inlined_call_operand.hbm [shape: f32[8,32], index: 3, kind: output, shape index: {}]  }
   0x1   :  { %9 = vsyncpa [#allocation6], 0 }
   0x2   :  { %10 = vsyncpa [#allocation4], 0  ;;  %s1181_s12 = smov [#allocation5]   ;;  %s1182_s14 = smov [#allocation2]  }
   0x3   :  { %s27_s13 = sshll.u32 %s1181_s12, 4  ;;  %s17_s15 = sshll.u32 %s1182_s14, 4  ;;  %s28_s13 = int_to_ptr.vmem [resolvable:$true] %s27_s13  ;;  %s18_s15 = int_to_ptr.vmem [resolvable:$true] %s17_s15 }
   0x4   :  { %s1087_s18 = scalar_lea.hbm %s1495_s1, 256 }
   0x5   :  { %p1088_p0 = scmp.ne.s32.totalorder %s1495_s1, %s1087_s18  ;;  %p1091_p1 = scmp.lt.u32.totalorder %s1087_s18, %s1495_s1 }
   0x7   :  { %p1093_p2 = pnand %p1091_p1, %p1088_p0 }
   0x9   :  { %1096 = shalt.err (!%p1093_p2)
}
   0xa   :  { %s1097_s23 = scalar_lea.vmem %s28_s13, 256  ;;  %p1102_p4 = scmp.lt.s32.totalorder %s28_s13, %s28_s13 }
   0xb   :  { %p1098_p3 = scmp.ne.s32.totalorder %s28_s13, %s1097_s23  ;;  %p1103_p5 = scmp.lt.s32.totalorder %s1097_s23, %s1097_s23 }
   0xd   :  { %p1104_p6 = por %p1103_p5, %p1102_p4 }
   0xf   :  { %p1105_p7 = pnand %p1104_p6, %p1098_p3 }
  0x11   :  { %1108 = shalt.err (!%p1105_p7)
}
  0x12   :  { %30 = dma.hbm_to_vmem [thread:$0]  %s1495_s1, 256, %s28_s13, [#allocation6]  }
  0x13   :  { %s1109_s28 = scalar_lea.hbm %s1494_s0, 256 }
  0x14   :  { %p1110_p8 = scmp.ne.s32.totalorder %s1494_s0, %s1109_s28  ;;  %p1113_p9 = scmp.lt.u32.totalorder %s1109_s28, %s1494_s0 }
  0x16   :  { %p1115_p10 = pnand %p1113_p9, %p1110_p8 }
  0x18   :  { %1118 = shalt.err (!%p1115_p10)
}
  0x19   :  { %s1119_s6 = scalar_lea.vmem %s18_s15, 256  ;;  %p1124_p12 = scmp.lt.s32.totalorder %s18_s15, %s18_s15 }
  0x1a   :  { %p1120_p11 = scmp.ne.s32.totalorder %s18_s15, %s1119_s6  ;;  %p1125_p13 = scmp.lt.s32.totalorder %s1119_s6, %s1119_s6 }
  0x1c   :  { %p1126_p0 = por %p1125_p13, %p1124_p12 }
  0x1e   :  { %p1127_p1 = pnand %p1126_p0, %p1120_p11 }
  0x20   :  { %1130 = shalt.err (!%p1127_p1)
}
  0x21   :  { %20 = dma.hbm_to_vmem [thread:$0]  %s1494_s0, 256, %s18_s15, [#allocation3]  }
  0x22   :  { %s1183_s8 = smov [#allocation7]   ;;  %s1131_s12 = scalar_lea.hbm %s1496_s2, 128 }
  0x23   :  { %s37_s9 = sshll.u32 %s1183_s8, 4  ;;  %p1132_p2 = scmp.ne.s32.totalorder %s1496_s2, %s1131_s12  ;;  %s38_s9 = int_to_ptr.vmem [resolvable:$true] %s37_s9 }
  0x24   :  { %p1135_p3 = scmp.lt.u32.totalorder %s1131_s12, %s1496_s2 }
  0x26   :  { %p1137_p4 = pnand %p1135_p3, %p1132_p2 }
  0x28   :  { %1140 = shalt.err (!%p1137_p4)
}
  0x29   :  { %s1141_s18 = scalar_lea.vmem %s38_s9, 128  ;;  %p1146_p6 = scmp.lt.s32.totalorder %s38_s9, %s38_s9 }
  0x2a   :  { %p1142_p5 = scmp.ne.s32.totalorder %s38_s9, %s1141_s18  ;;  %p1147_p7 = scmp.lt.s32.totalorder %s1141_s18, %s1141_s18 }
  0x2c   :  { %p1148_p8 = por %p1147_p7, %p1146_p6 }
  0x2e   :  { %p1149_p9 = pnand %p1148_p8, %p1142_p5 }
  0x30   :  { %1152 = shalt.err (!%p1149_p9)
}
  0x31   :  { %40 = dma.hbm_to_vmem [thread:$0]  %s1496_s2, 128, %s38_s9, [#allocation6]  }
  0x32   :  { %1175 = dma.done.wait [#allocation3], 256  }
  0x33   :  { %1176 = vsyncadd [#allocation3], 4294967040 }
  0x34   :  { %1177 = dma.done.wait [#allocation6], 384  }
  0x35   :  { %1178 = vsyncadd [#allocation6], 4294966912  ;;  %v1265_v0 = vld [vmem:[#allocation5] sm:$0xff]  ;;  %v54_v1 = vld [vmem:[#allocation2] sm:$0xff]  ;;  %v1184_v7 = vmov 0   ;;  %vm123_vm0 = vcmask 1043456   ;;  %v60_v15 = vlaneseq }
  0x36   :  { %v56_v2 = vsub.f32 1.0, %v1265_v0  ;;  %v1268_v3 = vld [vmem:[#allocation5 + $0x8] sm:$0xff]  ;;  %v55_v4 = vld [vmem:[#allocation2 + $0x8] sm:$0xff]  ;;  %162 = vmatprep.mubr.bf16.mxu0 %v1184_v7  ;;  %215 = vmatprep.mubr.bf16.mxu1 %v1184_v7  ;;  %s1185_s2 = smov 2   ;;  %s1186_s19 = smov 1   ;;  %v1275_v10 = vld [vmem:[#allocation7] sm:$0xff] }
  0x37   :  { %v57_v5 = vsub.f32 1.0, %v1268_v3  ;;  %v1288_v13 = vpack.c.bf16 %v1275_v10, %v1275_v10  ;;  %s1187_s20 = smov 112   ;;  %s1188_s21 = smov 120   ;;  %v1189_v14 = vmov 112   ;;  %v1294_v16 = vand.u32 127, %v60_v15 }
  0x38   :  { %v58_v6 = vmul.f32 %v56_v2, %v54_v1  ;;  %1080 = vset.pattern.permute.xlu0 %v1189_v14  ;;  %v1190_v22 = vmov 0.0   ;;  %vm119_vm7 = vcmask 64512   ;;  %s1191_s22 = smov 104   ;;  %s1192_s23 = smov 96   ;;  %vm1000_vm11 = vcmask 261120  }
  0x39   :  { %v59_v8 = vmul.f32 %v57_v5, %v55_v4  ;;  %v62_v17 = vadd.s32 128, %v1294_v16  ;;  %v1298_v18 = vand.u32 15, %v1294_v16  ;;  %vm112_vm5 = vcmp.lt.s32.totalorder %v1294_v16, 2  ;;  %s1195_s24 = smov 88   ;;  %s1196_s25 = smov 80  }
  0x3a   :  { %108 = vrot.lane.b32.xlu0 %v58_v6, %s1185_s2  ;;  %224 = vrot.lane.b32.xlu1 %v58_v6, %s1186_s19  ;;  %v106_v9 = vpack.c.bf16 %v58_v6, %v58_v6  ;;  %vm228_vm6 = vcmp.lt.s32.totalorder %v1294_v16, 1  ;;  %s1197_s26 = smov 4   ;;  %s1199_s27 = smov 72   ;;  %vm546_vm10 = vcmp.lt.s32.totalorder %v1294_v16, 4 }
  0x3b   :  { %v1277_v11 = vpack.c.bf16 %v59_v8, %v59_v8  ;;  %v1300_v19 = vand.u32 15, %v62_v17  ;;  %vm93_vm1 = vcmp.ge.s32.totalorder %v1298_v18, 2  ;;  %vm87_vm2 = vcmp.ge.s32.totalorder %v1298_v18, 1  ;;  %s1200_s28 = smov 56   ;;  %s1201_s29 = smov 64  }
  0x3c   :  { %v1280_v12 = vsel %vm123_vm0, %v106_v9, 0  ;;  %v1309_v23 = vsel %vm93_vm1, 1.0, %v1190_v22  ;;  %v1312_v24 = vsel %vm87_vm2, 1.0, %v1190_v22  ;;  %v1194_v9 = vmov 113   ;;  %s1202_s30 = smov 48   ;;  %s1203_s4 = smov 40  }
  0x3d   :  { %1026 = vmatprep.subr.msk.bf16.mxu1 %vm123_vm0, %v1277_v11  ;;  %vm88_vm3 = vcmp.ge.s32.totalorder %v1300_v19, 1  ;;  %vm94_vm4 = vcmp.ge.s32.totalorder %v1300_v19, 2  ;;  %vm99_vm8 = vcmp.ge.s32.totalorder %v1298_v18, 4  ;;  %vm100_vm9 = vcmp.ge.s32.totalorder %v1300_v19, 4  ;;  %s1205_s5 = smov 32   ;;  %s1206_s6 = smov 24  }
  0x3e   :  { %110 = vrot.lane.b32.xlu0 %v59_v8, %s1185_s2  ;;  %226 = vrot.lane.b32.xlu1 %v59_v8, %s1186_s19  ;;  %v1315_v25 = vsel %vm88_vm3, 1.0, %v1190_v22  ;;  %v1318_v26 = vsel %vm94_vm4, 1.0, %v1190_v22  ;;  %v1193_v8 = vmov 114   ;;  %s1208_s1 = smov [#allocation8]  }
  0x3f   :  { %184 = vmatpush1.bf16.msra.mxu1 %v1280_v12  ;;  %1082 = vset.pattern.permute.xlu1 %v1193_v8  ;;  %s1008_s7 = sshll.u32 %s1208_s1, 4  ;;  %s1009_s7 = int_to_ptr.vmem [resolvable:$true] %s1008_s7 }
  0x40   :  { %s1153_s8 = scalar_lea.vmem %s1009_s7, 128  ;;  %p1158_p11 = scmp.lt.s32.totalorder %s1009_s7, %s1009_s7 }
  0x41   :  { %p1154_p10 = scmp.ne.s32.totalorder %s1009_s7, %s1153_s8  ;;  %p1159_p12 = scmp.lt.s32.totalorder %s1153_s8, %s1153_s8 }
  0x42   :  { %172 = vrot.lane.b32.xlu0 %v1288_v13, %s1187_s20  ;;  %235 = vrot.lane.b32.xlu1 %v1288_v13, %s1188_s21 }
  0x43   :  { %p1160_p13 = por %p1159_p12, %p1158_p11 }
  0x45   :  { %p1161_p0 = pnand %p1160_p13, %p1154_p10 }
  0x46   :  { %291 = vperm.xlu0 %1080, %v1275_v10  }
  0x4a   :  { %1081 = vset.pattern.permute.xlu0 %v1194_v9 }
  0xac   :  { %v109_v20 = vpop.permute.xlu0 %108  ;;  %v225_v21 = vpop.permute.xlu1 %224 }
  0xb0   :  { %v111_v27 = vpop.permute.xlu0 %110  ;;  %v227_v28 = vpop.permute.xlu1 %226 }
  0xb1   :  { %v113_v29 = vsel %vm112_vm5, %v109_v20, %v111_v27  ;;  %v114_v30 = vsel %vm112_vm5, %v111_v27, %v109_v20  ;;  %v229_v31 = vsel %vm228_vm6, %v225_v21, %v227_v28  ;;  %v230_v32 = vsel %vm228_vm6, %v227_v28, %v225_v21 }
  0xb2   :  { %v115_v33 = vmul.f32 %v1309_v23, %v114_v30  ;;  %v231_v34 = vmul.f32 %v1312_v24, %v230_v32  ;;  %v232_v35 = vmul.f32 %v1315_v25, %v229_v31  ;;  %v116_v36 = vmul.f32 %v1318_v26, %v113_v29 }
  0xb4   :  { %v233_v37 = vpack.c.bf16 %v231_v34, %v231_v34  ;;  %v234_v38 = vpack.c.bf16 %v232_v35, %v232_v35  ;;  %v118_v39 = vpack.c.bf16 %v116_v36, %v116_v36  ;;  %v117_v40 = vpack.c.bf16 %v115_v33, %v115_v33  ;;  %v173_v41 = vpop.permute.xlu0 %172  ;;  %v236_v44 = vpop.permute.xlu1 %235 }
  0xb5   :  { %1027 = vmatmul.mubr.msk.bf16.vlgmr.msra.gmra.mrb[0].mxu1 %vm119_vm7, %v173_v41 }
  0xb6   :  { %1024 = vmatprep.subr.msk.bf16.mxu0 %vm123_vm0, %v118_v39  ;;  %v125_v42 = vsel %vm123_vm0, %v117_v40, 0  ;;  %353 = vmatprep.mubr.bf16.mxu1 %v1184_v7  ;;  %v241_v43 = vsel %vm123_vm0, %v233_v37, 0 }
  0xb7   :  { %131 = vmatpush1.bf16.msra.mxu0 %v125_v42 }
  0xb8   :  { %1028 = vmatprep.subr.msk.bf16.mxu0 %vm123_vm0, %v234_v38 }
  0xba   :  { %1025 = vmatmul.mubr.msk.bf16.vlgmr.msra.gmra.mrb[0].mxu0 %vm119_vm7, %v1288_v13 }
  0xbb   :  { %247 = vmatpush1.bf16.msra.mxu0 %v241_v43  ;;  %278 = vmatprep.mubr.bf16.mxu0 %v1184_v7 }
  0xc2   :  { %1029 = vmatmul.mubr.msk.bf16.vlgmr.msra.gmra.mrb[4].mxu0 %vm119_vm7, %v236_v44 }
  0xc3   :  { %405 = vmatprep.mubr.bf16.mxu0 %v1184_v7 }
  0xc5   :  { %v292_v56 = vpop.permute.xlu0 %291 }
 0x188   :  { %v217_v45 = vpop.f32.mrb[0].mxu1 }
 0x189   :  { %v219_v46 = vpop.f32.mrb[1].mxu1 }
 0x18a   :  { %v221_v47 = vpop.f32.mrb[2].mxu1 }
 0x18b   :  { %v222_v48 = vpop.f32.mrb[3].mxu1 }
 0x18d   :  { %v164_v49 = vpop.f32.mrb[0].mxu0 }
 0x18e   :  { %v218_v50 = vadd.f32 %v217_v45, %v164_v49  ;;  %v166_v51 = vpop.f32.mrb[1].mxu0 }
 0x18f   :  { %v220_v52 = vadd.f32 %v219_v46, %v166_v51  ;;  %v168_v53 = vpop.f32.mrb[2].mxu0 }
 0x190   :  { %v169_v54 = vpop.f32.mrb[3].mxu0 }
 0x195   :  { %v280_v55 = vpop.f32.mrb[4].mxu0 }
 0x196   :  { %v287_v57 = vadd.f32 %v280_v55, %v218_v50  ;;  %v282_v58 = vpop.f32.mrb[5].mxu0 }
 0x197   :  { %v288_v59 = vadd.f32 %v282_v58, %v220_v52  ;;  %v284_v60 = vpop.f32.mrb[6].mxu0 }
 0x198   :  { %v294_v61 = vadd.f32 %v292_v56, %v287_v57  ;;  %v285_v62 = vpop.f32.mrb[7].mxu0 }
 0x199   :  { %v295_v63 = vadd.f32 %v292_v56, %v288_v59 }
 0x19a   :  { %v296_v1 = vmax.f32 %v294_v61, 0.0 }
 0x19b   :  { %v297_v2 = vmax.f32 %v295_v63, 0.0 }
 0x19c   :  { %414 = vrot.lane.b32.xlu0 %v296_v1, %s1186_s19  ;;  %300 = vrot.lane.b32.xlu1 %v296_v1, %s1185_s2  ;;  %v298_v4 = vpack.c.bf16 %v296_v1, %v296_v1 }
 0x19d   :  { %v299_v5 = vpack.c.bf16 %v297_v2, %v297_v2 }
 0x19e   :  { %v368_v6 = vsel %vm123_vm0, %v298_v4, 0 }
 0x19f   :  { %1032 = vmatprep.subr.msk.bf16.mxu0 %vm123_vm0, %v299_v5 }
 0x1a0   :  { %302 = vrot.lane.b32.xlu1 %v297_v2, %s1185_s2  ;;  %374 = vmatpush1.bf16.msra.mxu0 %v368_v6 }
 0x1a1   :  { %310 = vrot.lane.b32.xlu0 %v1288_v13, %s1191_s22  ;;  %1036 = vmatprep.subr.msk.bf16.mxu0 %vm123_vm0, %v1277_v11 }
 0x1a4   :  { %416 = vrot.lane.b32.xlu1 %v297_v2, %s1186_s19 }
 0x1a5   :  { %424 = vrot.lane.b32.xlu0 %v1288_v13, %s1192_s23 }
 0x1a8   :  { %362 = vrot.lane.b32.xlu1 %v1288_v13, %s1195_s24 }
 0x1a9   :  { %479 = vperm.xlu0 %1081, %v1275_v10  }
 0x1ac   :  { %490 = vrot.lane.b32.xlu1 %v1288_v13, %s1196_s25 }
 0x1b0   :  { %487 = vperm.xlu1 %1082, %v1275_v10  }
 0x20e   :  { %v301_v11 = vpop.permute.xlu1 %300  ;;  %v415_v27 = vpop.permute.xlu0 %414 }
 0x212   :  { %v303_v14 = vpop.permute.xlu1 %302 }
 0x213   :  { %v304_v15 = vsel %vm112_vm5, %v301_v11, %v303_v14  ;;  %v305_v17 = vsel %vm112_vm5, %v303_v14, %v301_v11  ;;  %v311_v36 = vpop.permute.xlu0 %310 }
 0x214   :  { %v306_v20 = vmul.f32 %v1309_v23, %v305_v17  ;;  %v307_v21 = vmul.f32 %v1318_v26, %v304_v15 }
 0x216   :  { %v308_v28 = vpack.c.bf16 %v306_v20, %v306_v20  ;;  %v309_v29 = vpack.c.bf16 %v307_v21, %v307_v21  ;;  %v417_v30 = vpop.permute.xlu1 %416  ;;  %v1198_v20 = vmov 115  }
 0x217   :  { %v418_v31 = vsel %vm228_vm6, %v415_v27, %v417_v30  ;;  %v419_v32 = vsel %vm228_vm6, %v417_v30, %v415_v27  ;;  %1083 = vset.pattern.permute.xlu0 %v1198_v20  ;;  %v1410_v27 = vsel %vm99_vm8, 1.0, %v1190_v22 }
 0x218   :  { %v420_v33 = vmul.f32 %v1312_v24, %v419_v32  ;;  %v421_v34 = vmul.f32 %v1315_v25, %v418_v31  ;;  %1030 = vmatprep.subr.msk.bf16.mxu1 %vm123_vm0, %v309_v29  ;;  %v316_v35 = vsel %vm123_vm0, %v308_v28, 0  ;;  %v425_v25 = vpop.permute.xlu0 %424  ;;  %v1413_v28 = vsel %vm100_vm9, 1.0, %v1190_v22 }
 0x219   :  { %322 = vmatpush1.bf16.msra.mxu1 %v316_v35 }
 0x21a   :  { %v422_v37 = vpack.c.bf16 %v420_v33, %v420_v33  ;;  %v423_v38 = vpack.c.bf16 %v421_v34, %v421_v34  ;;  %v363_v39 = vpop.permute.xlu1 %362 }
 0x21b   :  { %1033 = vmatmul.mubr.msk.bf16.vlgmr.msra.gmra.mrb[8].mxu0 %vm119_vm7, %v363_v39 }
 0x21c   :  { %1031 = vmatmul.mubr.msk.bf16.vlgmr.msra.gmra.mrb[4].mxu1 %vm119_vm7, %v311_v36  ;;  %1034 = vmatprep.subr.msk.bf16.mxu1 %vm123_vm0, %v423_v38  ;;  %v430_v40 = vsel %vm123_vm0, %v422_v37, 0 }
 0x21d   :  { %436 = vmatpush1.bf16.msra.mxu1 %v430_v40  ;;  %496 = vmatpush1.bf16.msra.mxu0 %v1280_v12 }
 0x21e   :  { %467 = vmatprep.mubr.bf16.mxu1 %v1184_v7  ;;  %527 = vmatprep.mubr.bf16.mxu0 %v1184_v7  ;;  %v491_v24 = vpop.permute.xlu1 %490 }
 0x223   :  { %1037 = vmatmul.mubr.msk.bf16.vlgmr.msra.gmra.mrb[12].mxu0 %vm119_vm7, %v491_v24 }
 0x224   :  { %1035 = vmatmul.mubr.msk.bf16.vlgmr.msra.gmra.mrb[8].mxu1 %vm119_vm7, %v425_v25  ;;  %648 = vmatprep.mubr.bf16.mxu0 %v1184_v7 }
 0x225   :  { %596 = vmatprep.mubr.bf16.mxu1 %v1184_v7 }
 0x228   :  { %v480_v50 = vpop.permute.xlu0 %479 }
 0x22f   :  { %v488_v52 = vpop.permute.xlu1 %487 }
 0x2ee   :  { %v407_v41 = vpop.f32.mrb[8].mxu0 }
 0x2ef   :  { %v355_v42 = vpop.f32.mrb[4].mxu1  ;;  %v409_v43 = vpop.f32.mrb[9].mxu0 }
 0x2f0   :  { %v408_v44 = vadd.f32 %v407_v41, %v355_v42  ;;  %v357_v45 = vpop.f32.mrb[5].mxu1  ;;  %v411_v12 = vpop.f32.mrb[10].mxu0 }
 0x2f1   :  { %v410_v46 = vadd.f32 %v409_v43, %v357_v45  ;;  %v359_v47 = vpop.f32.mrb[6].mxu1  ;;  %v412_v48 = vpop.f32.mrb[11].mxu0 }
 0x2f2   :  { %v360_v49 = vpop.f32.mrb[7].mxu1 }
 0x2f6   :  { %v529_v51 = vpop.f32.mrb[12].mxu0 }
 0x2f7   :  { %v469_v53 = vpop.f32.mrb[8].mxu1  ;;  %v531_v54 = vpop.f32.mrb[13].mxu0  ;;  %v530_v63 = vadd.f32 %v529_v51, %v488_v52 }
 0x2f8   :  { %v476_v55 = vadd.f32 %v469_v53, %v408_v44  ;;  %v471_v56 = vpop.f32.mrb[9].mxu1  ;;  %v533_v57 = vpop.f32.mrb[14].mxu0  ;;  %v532_v2 = vadd.f32 %v531_v54, %v488_v52 }
 0x2f9   :  { %v477_v58 = vadd.f32 %v471_v56, %v410_v46  ;;  %v473_v59 = vpop.f32.mrb[10].mxu1  ;;  %v534_v60 = vpop.f32.mrb[15].mxu0 }
 0x2fa   :  { %v482_v61 = vadd.f32 %v480_v50, %v476_v55  ;;  %v474_v62 = vpop.f32.mrb[11].mxu1 }
 0x2fb   :  { %v483_v1 = vadd.f32 %v480_v50, %v477_v58 }
 0x2fc   :  { %v484_v4 = vmax.f32 %v482_v61, 0.0 }
 0x2fd   :  { %v485_v5 = vmax.f32 %v483_v1, 0.0 }
 0x2fe   :  { %v536_v6 = vadd.f32 %v530_v63, %v484_v4 }
 0x2ff   :  { %v537_v8 = vadd.f32 %v532_v2, %v485_v5  ;;  %v1204_v5 = vmov 116  }
 0x300   :  { %v1383_v9 = vmax.f32 %v536_v6, 0.0  ;;  %1084 = vset.pattern.permute.xlu1 %v1204_v5 }
 0x301   :  { %v1385_v11 = vmax.f32 %v537_v8, 0.0 }
 0x302   :  { %542 = vrot.lane.b32.xlu1 %v1383_v9, %s1197_s26  ;;  %v540_v14 = vpack.c.bf16 %v1383_v9, %v1383_v9 }
 0x303   :  { %544 = vrot.lane.b32.xlu0 %v1385_v11, %s1197_s26  ;;  %v541_v15 = vpack.c.bf16 %v1385_v11, %v1385_v11 }
 0x304   :  { %v611_v17 = vsel %vm123_vm0, %v540_v14, 0 }
 0x305   :  { %1040 = vmatprep.subr.msk.bf16.mxu0 %vm123_vm0, %v541_v15 }
 0x306   :  { %657 = vrot.lane.b32.xlu1 %v1383_v9, %s1185_s2  ;;  %617 = vmatpush1.bf16.msra.mxu0 %v611_v17 }
 0x307   :  { %659 = vrot.lane.b32.xlu0 %v1385_v11, %s1185_s2 }
 0x30a   :  { %553 = vrot.lane.b32.xlu1 %v1288_v13, %s1199_s27 }
 0x30b   :  { %605 = vrot.lane.b32.xlu0 %v1288_v13, %s1200_s28 }
 0x30e   :  { %667 = vrot.lane.b32.xlu1 %v1288_v13, %s1201_s29 }
 0x30f   :  { %722 = vperm.xlu0 %1083, %v1275_v10  }
 0x374   :  { %v543_v21 = vpop.permute.xlu1 %542 }
 0x375   :  { %v545_v29 = vpop.permute.xlu0 %544 }
 0x376   :  { %v547_v30 = vsel %vm546_vm10, %v543_v21, %v545_v29  ;;  %v548_v31 = vsel %vm546_vm10, %v545_v29, %v543_v21 }
 0x377   :  { %v549_v18 = vmul.f32 %v1410_v27, %v548_v31  ;;  %v550_v19 = vmul.f32 %v1413_v28, %v547_v30 }
 0x378   :  { %v658_v32 = vpop.permute.xlu1 %657 }
 0x379   :  { %v551_v33 = vpack.c.bf16 %v549_v18, %v549_v18  ;;  %v552_v34 = vpack.c.bf16 %v550_v19, %v550_v19  ;;  %v660_v35 = vpop.permute.xlu0 %659 }
 0x37a   :  { %v661_v36 = vsel %vm112_vm5, %v658_v32, %v660_v35  ;;  %v662_v22 = vsel %vm112_vm5, %v660_v35, %v658_v32 }
 0x37b   :  { %v663_v37 = vmul.f32 %v1309_v23, %v662_v22  ;;  %v664_v38 = vmul.f32 %v1318_v26, %v661_v36  ;;  %1038 = vmatprep.subr.msk.bf16.mxu1 %vm123_vm0, %v552_v34  ;;  %v559_v39 = vsel %vm123_vm0, %v551_v33, 0 }
 0x37c   :  { %565 = vmatpush1.bf16.msra.mxu1 %v559_v39  ;;  %v554_v40 = vpop.permute.xlu1 %553 }
 0x37d   :  { %v665_v24 = vpack.c.bf16 %v663_v37, %v663_v37  ;;  %v666_v25 = vpack.c.bf16 %v664_v38, %v664_v38  ;;  %v606_v41 = vpop.permute.xlu0 %605 }
 0x37e   :  { %1041 = vmatmul.mubr.msk.bf16.vlgmr.msra.gmra.mrb[16].mxu0 %vm119_vm7, %v606_v41 }
 0x37f   :  { %1039 = vmatmul.mubr.msk.bf16.vlgmr.msra.gmra.mrb[12].mxu1 %vm119_vm7, %v554_v40  ;;  %1042 = vmatprep.subr.msk.bf16.mxu1 %vm123_vm0, %v666_v25  ;;  %v673_v42 = vsel %vm123_vm0, %v665_v24, 0 }
 0x380   :  { %679 = vmatpush1.bf16.msra.mxu1 %v673_v42  ;;  %710 = vmatprep.mubr.bf16.mxu1 %v1184_v7  ;;  %v668_v43 = vpop.permute.xlu1 %667 }
 0x381   :  { %784 = vmatprep.mubr.bf16.mxu0 %v1184_v7 }
 0x387   :  { %1043 = vmatmul.mubr.msk.bf16.vlgmr.msra.gmra.mrb[16].mxu1 %vm119_vm7, %v668_v43 }
 0x388   :  { %836 = vmatprep.mubr.bf16.mxu1 %v1184_v7 }
 0x38e   :  { %v723_v54 = vpop.permute.xlu0 %722 }
 0x451   :  { %v650_v44 = vpop.f32.mrb[16].mxu0 }
 0x452   :  { %v598_v45 = vpop.f32.mrb[12].mxu1  ;;  %v652_v12 = vpop.f32.mrb[17].mxu0 }
 0x453   :  { %v651_v46 = vadd.f32 %v650_v44, %v598_v45  ;;  %v600_v47 = vpop.f32.mrb[13].mxu1  ;;  %v654_v48 = vpop.f32.mrb[18].mxu0 }
 0x454   :  { %v653_v49 = vadd.f32 %v652_v12, %v600_v47  ;;  %v602_v50 = vpop.f32.mrb[14].mxu1  ;;  %v655_v51 = vpop.f32.mrb[19].mxu0 }
 0x455   :  { %v603_v52 = vpop.f32.mrb[15].mxu1 }
 0x45a   :  { %v712_v53 = vpop.f32.mrb[16].mxu1 }
 0x45b   :  { %v719_v55 = vadd.f32 %v712_v53, %v651_v46  ;;  %v714_v56 = vpop.f32.mrb[17].mxu1 }
 0x45c   :  { %v720_v57 = vadd.f32 %v714_v56, %v653_v49  ;;  %v716_v58 = vpop.f32.mrb[18].mxu1 }
 0x45d   :  { %v725_v59 = vadd.f32 %v723_v54, %v719_v55  ;;  %v717_v60 = vpop.f32.mrb[19].mxu1 }
 0x45e   :  { %v726_v61 = vadd.f32 %v723_v54, %v720_v57 }
 0x45f   :  { %v727_v62 = vmax.f32 %v725_v59, 0.0 }
 0x460   :  { %v728_v63 = vmax.f32 %v726_v61, 0.0 }
 0x461   :  { %845 = vrot.lane.b32.xlu0 %v727_v62, %s1185_s2  ;;  %731 = vrot.lane.b32.xlu1 %v727_v62, %s1197_s26  ;;  %v729_v1 = vpack.c.bf16 %v727_v62, %v727_v62 }
 0x462   :  { %v730_v2 = vpack.c.bf16 %v728_v63, %v728_v63 }
 0x463   :  { %v799_v4 = vsel %vm123_vm0, %v729_v1, 0 }
 0x464   :  { %1046 = vmatprep.subr.msk.bf16.mxu1 %vm123_vm0, %v730_v2 }
 0x465   :  { %733 = vrot.lane.b32.xlu1 %v728_v63, %s1197_s26  ;;  %805 = vmatpush1.bf16.msra.mxu1 %v799_v4 }
 0x466   :  { %741 = vrot.lane.b32.xlu0 %v1288_v13, %s1202_s30 }
 0x469   :  { %847 = vrot.lane.b32.xlu1 %v728_v63, %s1185_s2 }
 0x46a   :  { %855 = vrot.lane.b32.xlu0 %v1288_v13, %s1203_s4 }
 0x46d   :  { %793 = vrot.lane.b32.xlu1 %v1288_v13, %s1205_s5 }
 0x46e   :  { %927 = vrot.lane.b32.xlu0 %v1288_v13, %s1206_s6 }
 0x471   :  { %910 = vperm.xlu1 %1084, %v1275_v10  }
 0x4d3   :  { %v732_v6 = vpop.permute.xlu1 %731  ;;  %v846_v21 = vpop.permute.xlu0 %845 }
 0x4d7   :  { %v734_v8 = vpop.permute.xlu1 %733 }
 0x4d8   :  { %v735_v14 = vsel %vm546_vm10, %v732_v6, %v734_v8  ;;  %v736_v15 = vsel %vm546_vm10, %v734_v8, %v732_v6 }
 0x4d9   :  { %v737_v17 = vmul.f32 %v1410_v27, %v736_v15  ;;  %v738_v20 = vmul.f32 %v1413_v28, %v735_v14  ;;  %v742_v28 = vpop.permute.xlu0 %741 }
 0x4db   :  { %v739_v29 = vpack.c.bf16 %v737_v17, %v737_v17  ;;  %v740_v30 = vpack.c.bf16 %v738_v20, %v738_v20  ;;  %v848_v31 = vpop.permute.xlu1 %847 }
 0x4dc   :  { %v849_v13 = vsel %vm112_vm5, %v846_v21, %v848_v31  ;;  %v850_v18 = vsel %vm112_vm5, %v848_v31, %v846_v21 }
 0x4dd   :  { %v851_v19 = vmul.f32 %v1309_v23, %v850_v18  ;;  %v852_v32 = vmul.f32 %v1318_v26, %v849_v13  ;;  %1044 = vmatprep.subr.msk.bf16.mxu0 %vm123_vm0, %v740_v30  ;;  %v747_v27 = vsel %vm123_vm0, %v739_v29, 0  ;;  %v856_v23 = vpop.permute.xlu0 %855  ;;  %v1207_v26 = vmov 117  }
 0x4de   :  { %753 = vmatpush1.bf16.msra.mxu0 %v747_v27  ;;  %1085 = vset.pattern.permute.xlu1 %v1207_v26 }
 0x4df   :  { %v853_v33 = vpack.c.bf16 %v851_v19, %v851_v19  ;;  %v854_v34 = vpack.c.bf16 %v852_v32, %v852_v32  ;;  %v794_v35 = vpop.permute.xlu1 %793  ;;  %1086 = vset.pattern.permute.xlu0 %v1207_v26  ;;  %924 = vperm.xlu1 %1085, %v1275_v10  }
 0x4e0   :  { %1047 = vmatmul.mubr.msk.bf16.vlgmr.msra.gmra.mrb[20].mxu1 %vm119_vm7, %v794_v35 }
 0x4e1   :  { %1045 = vmatmul.mubr.msk.bf16.vlgmr.msra.gmra.mrb[20].mxu0 %vm119_vm7, %v742_v28  ;;  %1048 = vmatprep.subr.msk.bf16.mxu0 %vm123_vm0, %v854_v34  ;;  %v861_v16 = vsel %vm123_vm0, %v853_v33, 0  ;;  %v928_v58 = vpop.permute.xlu0 %927 }
 0x4e2   :  { %867 = vmatpush1.bf16.msra.mxu0 %v861_v16  ;;  %898 = vmatprep.mubr.bf16.mxu0 %v1184_v7 }
 0x4e3   :  { %970 = vmatprep.mubr.bf16.mxu1 %v1184_v7 }
 0x4e9   :  { %1049 = vmatmul.mubr.msk.bf16.vlgmr.msra.gmra.mrb[24].mxu0 %vm119_vm7, %v856_v23 }
 0x4f0   :  { %v911_v7 = vpop.permute.xlu1 %910 }
 0x55e   :  { %v925_v59 = vpop.permute.xlu1 %924 }
 0x5b3   :  { %v838_v36 = vpop.f32.mrb[20].mxu1 }
 0x5b4   :  { %v786_v22 = vpop.f32.mrb[20].mxu0  ;;  %v840_v37 = vpop.f32.mrb[21].mxu1 }
 0x5b5   :  { %v839_v38 = vadd.f32 %v838_v36, %v786_v22  ;;  %v788_v39 = vpop.f32.mrb[21].mxu0  ;;  %v842_v40 = vpop.f32.mrb[22].mxu1 }
 0x5b6   :  { %v841_v24 = vadd.f32 %v840_v37, %v788_v39  ;;  %v790_v25 = vpop.f32.mrb[22].mxu0  ;;  %v843_v41 = vpop.f32.mrb[23].mxu1 }
 0x5b7   :  { %v791_v42 = vpop.f32.mrb[23].mxu0 }
 0x5bc   :  { %v900_v43 = vpop.f32.mrb[24].mxu0 }
 0x5bd   :  { %v907_v44 = vadd.f32 %v900_v43, %v839_v38  ;;  %v902_v45 = vpop.f32.mrb[25].mxu0 }
 0x5be   :  { %v908_v12 = vadd.f32 %v902_v45, %v841_v24  ;;  %v904_v46 = vpop.f32.mrb[26].mxu0 }
 0x5bf   :  { %v913_v47 = vadd.f32 %v911_v7, %v907_v44  ;;  %v905_v48 = vpop.f32.mrb[27].mxu0 }
 0x5c0   :  { %v914_v49 = vadd.f32 %v911_v7, %v908_v12 }
 0x5c1   :  { %v915_v10 = vmax.f32 %v913_v47, 0.0 }
 0x5c2   :  { %v916_v50 = vmax.f32 %v914_v49, 0.0 }
 0x5c3   :  { %v917_v51 = vadd.f32 %v915_v10, %v1383_v9 }
 0x5c4   :  { %v918_v52 = vadd.f32 %v916_v50, %v1385_v11 }
 0x5c5   :  { %v919_v53 = vmax.f32 %v917_v51, 0.0 }
 0x5c6   :  { %v920_v54 = vmax.f32 %v918_v52, 0.0 }
 0x5c7   :  { %v921_v55 = vpack.c.bf16 %v919_v53, %v919_v53 }
 0x5c8   :  { %v922_v56 = vpack.c.bf16 %v920_v54, %v920_v54 }
 0x5c9   :  { %v933_v57 = vsel %vm123_vm0, %v921_v55, 0 }
 0x5ca   :  { %1050 = vmatprep.subr.msk.bf16.mxu1 %vm123_vm0, %v922_v56 }
 0x5cb   :  { %939 = vmatpush1.bf16.msra.mxu1 %v933_v57 }
 0x5ce   :  { %1051 = vmatmul.mubr.msk.bf16.vlgmr.msra.gmra.mrb[24].mxu1 %vm119_vm7, %v928_v58 }
 0x6a1   :  { %v972_v60 = vpop.f32.mrb[24].mxu1 }
 0x6a2   :  { %v973_v61 = vadd.f32 %v972_v60, %v925_v59  ;;  %v974_v62 = vpop.f32.mrb[25].mxu1 }
 0x6a3   :  { %v976_v63 = vpop.f32.mrb[26].mxu1  ;;  %v975_v11 = vadd.f32 %v974_v62, %v925_v59 }
 0x6a4   :  { %v979_v9 = vmul.f32 %v973_v61, %v1265_v0  ;;  %v977_v1 = vpop.f32.mrb[27].mxu1 }
 0x6a5   :  { %v980_v2 = vmul.f32 %v975_v11, %v1268_v3 }
 0x6a6   :  { %982 = vrot.lane.b32.xlu0 %v979_v9, %s1192_s23  ;;  %986 = vrot.lane.b32.xlu1 %v979_v9, %s1201_s29 }
 0x6aa   :  { %990 = vrot.lane.b32.xlu0 %v979_v9, %s1205_s5  ;;  %996 = vrot.lane.b32.xlu1 %v980_v2, %s1192_s23 }
 0x718   :  { %v983_v4 = vpop.permute.xlu0 %982  ;;  %v987_v6 = vpop.permute.xlu1 %986 }
 0x719   :  { %v985_v5 = vadd.f32 %v983_v4, %v979_v9 }
 0x71b   :  { %v989_v8 = vadd.f32 %v987_v6, %v985_v5 }
 0x71c   :  { %v991_v14 = vpop.permute.xlu0 %990  ;;  %v997_v17 = vpop.permute.xlu1 %996 }
 0x71d   :  { %v993_v15 = vadd.f32 %v991_v14, %v989_v8 }
 0x71f   :  { %v994_v0 = vadd.f32 %v993_v15, %v980_v2 }
 0x721   :  { %v999_v20 = vadd.f32 %v997_v17, %v994_v0 }
 0x723   :  { %1001 = vst.msk [vmem:[#allocation8] sm:$0xff] %vm1000_vm11, %v999_v20 }
 0x724   :  { %1164 = shalt.err (!%p1161_p0)
}
 0x725   :  { %s1165_s11 = scalar_lea.hbm %s1497_s3, 128 }
 0x726   :  { %p1166_p1 = scmp.ne.s32.totalorder %s1497_s3, %s1165_s11  ;;  %p1169_p2 = scmp.lt.u32.totalorder %s1165_s11, %s1497_s3 }
 0x728   :  { %p1171_p3 = pnand %p1169_p2, %p1166_p1 }
 0x72a   :  { %1174 = shalt.err (!%p1171_p3)
}
 0x72b   :  { %1011 = dma.vmem_to_hbm [thread:$0]  %s1009_s7, 128, %s1497_s3, [#allocation4]  }
 0x72c   :  { %1179 = dma.done.wait [#allocation4], 128  }
 0x72d   :  { %1180 = vsyncadd [#allocation4], 4294967168 }
 0x72e   :  { %1015 = vsyncpa [#allocation3], 1 }
 0x72f   :  { %1016 = vsyncpa [#allocation6], 1 }
 0x730   :  { %1017 = vsyncpa [#allocation4], 1 }

</bundles_post_ra>
